<compile_context>
chip_gen: v6e
topology: v6e:2x2x1
jax: 0.10.0
libtpu: 0.0.40
codegen_flags: <defaults>
</compile_context>

<pallas_src>
import math

import jax
import jax.numpy as jnp
import numpy as np
from jax.experimental import pallas as pl
from jax.experimental.pallas import tpu as pltpu

_LANE = 128


def _cdiv(a, b):
    return -(-a // b)


def _round_up(x, m):
    return _cdiv(x, m) * m


def _sublane_tile(dtype):
    # 8 for 4-byte dtypes, 16 for 2-byte, 32 for 1-byte (vreg sublane packing).
    return max(8, 32 // jnp.dtype(dtype).itemsize)


def _transpose3d_kernel(x_ref, o_ref):
    # Regime A: x_ref is (TB, M, N), o_ref is (TB, N, M).
    o_ref[...] = pltpu.einshape("bmn->bnm", x_ref[...])


def _transpose2d_kernel(x_ref, o_ref):
    # Regime B: x_ref is (tm, tn), o_ref is (tn, tm) (leading batch dim squeezed).
    o_ref[...] = pltpu.einshape("mn->nm", x_ref[...])


def transpose_last(
    x,
    deconstruct_idx=None,
    *,
    batch_pack_bytes=4 << 20,      # Regime A: per-buffer padded-byte budget
    trailing_tile_bytes=4 << 20,   # Regime B: per-buffer tile byte budget
    small_fallback_bytes=1 << 20,  # underfilled-slab XLA fallback threshold
):
    """Pallas equivalent of fairseq TransposeLast.forward."""
    if deconstruct_idx is not None:
        x = x[deconstruct_idx]

    if x.ndim < 2:
        raise ValueError("transpose_last requires at least 2 dims")

    *lead, M, N = x.shape

    # Metadata-only fast path: swapping a singleton axis is a pure reshape.
    if M == 1 or N == 1:
        return x.reshape(*lead, N, M)

    itemsize = jnp.dtype(x.dtype).itemsize
    sub = _sublane_tile(x.dtype)

    # Tiny, lane/sublane-underfilled slabs: a standalone kernel only produces
    # masked stores and short DMA bursts; let XLA fuse the transpose instead.
    if (N < _LANE or M < sub) and x.size * itemsize <= small_fallback_bytes:
        return jnp.swapaxes(x, -2, -1)

    B = int(np.prod(lead)) if lead else 1
    x3 = x.reshape(B, M, N)

    # Padded (physical VMEM) footprint of one (M, N) slab on each side of the
    # transpose: last dim rounds to 128 lanes, second-last to the sublane tile.
    in_slab_pad = _round_up(M, sub) * _round_up(N, _LANE) * itemsize
    out_slab_pad = _round_up(N, sub) * _round_up(M, _LANE) * itemsize
    slab_pad = max(in_slab_pad, out_slab_pad)

    # Pure-bandwidth op: advise XLA's scheduler so surrounding HLO can overlap.
    cost = pl.CostEstimate(
        flops=0, transcendentals=0, bytes_accessed=2 * B * M * N * itemsize
    )

    if slab_pad <= batch_pack_bytes:
        # ---- Regime A: small trailing dims -> pack batch elements per block.
        tb = max(1, batch_pack_bytes // slab_pad)
        tb = min(tb, B)
        if B >= 2:
            # At least 2 grid steps on the parallel axis (v7x has 2 TCs/chip).
            tb = min(tb, _cdiv(B, 2))
        # Re-balance so the final step is not a tiny remainder.
        tb = _cdiv(B, _cdiv(B, tb))
        grid = (_cdiv(B, tb),)
        kernel = _transpose3d_kernel
        # Trailing block dims equal the full array dims -> (8,128) rule holds.
        in_specs = [pl.BlockSpec((tb, M, N), lambda b: (b, 0, 0))]
        out_specs = pl.BlockSpec((tb, N, M), lambda b: (b, 0, 0))
        dim_sem = ("parallel",)
        in_block_bytes = tb * in_slab_pad
        out_block_bytes = tb * out_slab_pad
    else:
        # ---- Regime B: tile the trailing dims (dtype-aware byte budget).
        t = int(math.isqrt(max(trailing_tile_bytes // itemsize, _LANE * _LANE)))
        tile = max(_LANE, (t // _LANE) * _LANE)
        # Balanced tiles: avoid a full tile + sliver remainder (e.g. M=513).
        tm = M if M <= tile else _round_up(_cdiv(M, _cdiv(M, tile)), _LANE)
        tn = N if N <= tile else _round_up(_cdiv(N, _cdiv(N, tile)), _LANE)
        grid = (B, _cdiv(M, tm), _cdiv(N, tn))
        kernel = _transpose2d_kernel
        # Leading dim squeezed (None) -> kernel sees 2-D tiles; block-level
        # transpose is expressed by swapping (i, j) in the output index_map.
        in_specs = [pl.BlockSpec((None, tm, tn), lambda b, i, j: (b, i, j))]
        out_specs = pl.BlockSpec((None, tn, tm), lambda b, i, j: (b, j, i))
        dim_sem = ("parallel", "parallel", "parallel")
        in_block_bytes = _round_up(tm, sub) * _round_up(tn, _LANE) * itemsize
        out_block_bytes = _round_up(tn, sub) * _round_up(tm, _LANE) * itemsize
        # TODO(synk): sweep pipeline_mode=pl.Buffered(3) on out_specs on HW;
        # kept at the default double-buffer here to stay within every chip's
        # scoped VMEM without a measured sweep.

    # Double-buffered input + output blocks; raise the scoped-VMEM limit so
    # v5e's 16 MiB default never rejects the pipeline, capped well under
    # v7x's 64 MiB physical VMEM.
    vmem_need = 2 * (in_block_bytes + out_block_bytes)
    vmem_limit = int(min(48 << 20, max(32 << 20, vmem_need + (4 << 20))))

    out3 = pl.pallas_call(
        kernel,
        out_shape=jax.ShapeDtypeStruct((B, N, M), x.dtype),
        grid_spec=pltpu.PrefetchScalarGridSpec(
            num_scalar_prefetch=0,
            grid=grid,
            in_specs=in_specs,
            out_specs=out_specs,
        ),
        compiler_params=pltpu.CompilerParams(
            dimension_semantics=dim_sem, vmem_limit_bytes=vmem_limit
        ),
        cost_estimate=cost,
    )(x3)

    return out3.reshape(*lead, N, M)


if __name__ == "__main__":
    key = jax.random.PRNGKey(0)
    k1, k2, k3, k4, k5 = jax.random.split(key, 5)

    # 1) Regime A (Pallas): wav2vec-style (B, T, C) -> (B, C, T), lane-full C.
    x1 = jax.random.normal(k1, (2, 8, 256), dtype=jnp.float32)
    y1 = jax.block_until_ready(transpose_last(x1))
    np.testing.assert_array_equal(np.asarray(y1), np.asarray(jnp.swapaxes(x1, -2, -1)))

    # 2) Tuple input with deconstruct_idx; small lane-underfilled slab -> XLA
    #    fallback path (same semantics, no standalone kernel).
    x2 = jax.random.normal(k2, (2, 4, 16, 16), dtype=jnp.float32)
    y2 = jax.block_until_ready(transpose_last((x1, x2), deconstruct_idx=1))
    np.testing.assert_array_equal(np.asarray(y2), np.asarray(jnp.swapaxes(x2, -2, -1)))

    # 3) Regime B (Pallas) forced via small thresholds so the test stays small
    #    while exercising balanced 128x128 tiles with partial edge blocks.
    x3 = jax.random.normal(k3, (2, 200, 200), dtype=jnp.float32)
    y3 = jax.block_until_ready(
        transpose_last(x3, batch_pack_bytes=1024, trailing_tile_bytes=128 * 128 * 4)
    )
    np.testing.assert_array_equal(np.asarray(y3), np.asarray(jnp.swapaxes(x3, -2, -1)))

    # 4) bf16 Regime A (dtype-aware sublane tile = 16).
    x4 = jax.random.normal(k4, (2, 16, 384), dtype=jnp.bfloat16)
    y4 = jax.block_until_ready(transpose_last(x4))
    np.testing.assert_array_equal(
        np.asarray(y4.astype(jnp.float32)),
        np.asarray(jnp.swapaxes(x4, -2, -1).astype(jnp.float32)),
    )

    # 5) Singleton-axis fast path (pure reshape, no kernel launched).
    x5 = jax.random.normal(k5, (2, 1, 32), dtype=jnp.float32)
    y5 = jax.block_until_ready(transpose_last(x5))
    np.testing.assert_array_equal(np.asarray(y5), np.asarray(jnp.swapaxes(x5, -2, -1)))

    print("KERNEL_OK")
</pallas_src>

<mosaic_0001>
module attributes {stable_mosaic.version = 11 : i64} {
  func.func @_transpose3d_kernel(%arg0: i32, %arg1: memref<1x8x256xf32, #tpu.memory_space<vmem>>, %arg2: memref<1x256x8xf32, #tpu.memory_space<vmem>>) attributes {dimension_semantics = [#tpu.dimension_semantics<parallel>], iteration_bounds = array<i64: 2>, scalar_prefetch = 0 : i64, scratch_operands = 0 : i64, tpu.core_type = #tpu.core_type<tc>, window_params = [{transform_indices = @transform_0, window_bounds = array<i64: 1, 8, 256>}, {transform_indices = @transform_1, window_bounds = array<i64: 1, 256, 8>}]} {
    %c0 = arith.constant 0 : index
    %c0_0 = arith.constant 0 : index
    %c0_1 = arith.constant 0 : index
    %0 = vector.load %arg1[%c0, %c0_0, %c0_1] : memref<1x8x256xf32, #tpu.memory_space<vmem>>, vector<1x8x256xf32>
    %1 = tpu.transpose %0, [0, 2, 1] : vector<1x8x256xf32> -> vector<1x256x8xf32>
    %c0_2 = arith.constant 0 : index
    %c0_3 = arith.constant 0 : index
    %c0_4 = arith.constant 0 : index
    %2 = vector.load %arg2[%c0_2, %c0_3, %c0_4] : memref<1x256x8xf32, #tpu.memory_space<vmem>>, vector<1x256x8xf32>
    tpu.vector_store %arg2[%c0_2, %c0_3, %c0_4], %1 {strides = array<i32>} : memref<1x256x8xf32, #tpu.memory_space<vmem>>, vector<1x256x8xf32>,
    return
  }
  func.func @transform_0(%arg0: i32) -> (i32, i32, i32) {
    %c0_i32 = arith.constant 0 : i32
    %c0_i32_0 = arith.constant 0 : i32
    %c0_i32_1 = arith.constant 0 : i32
    return %arg0, %c0_i32, %c0_i32_0 : i32, i32, i32
  }
  func.func @transform_1(%arg0: i32) -> (i32, i32, i32) {
    %c0_i32 = arith.constant 0 : i32
    %c0_i32_0 = arith.constant 0 : i32
    %c0_i32_1 = arith.constant 0 : i32
    return %arg0, %c0_i32, %c0_i32_0 : i32, i32, i32
  }
}

</mosaic_0001>

<bundles_post_ra>
// kernel: tpu_custom_call.1
= control target key start
LH: loop header
LB: loop body
LE: loop exit
PB: predicated region body
PF: predicated region fallthrough
CT: control target
= control target key end

     0   :  { %6 = vsyncpa [#allocation3], 0  ;;  %s596_s0 = inlined_call_operand.hbm [shape: f32[2,8,256], index: 0, kind: input, shape index: {}]   ;;  %s597_s1 = inlined_call_operand.vmem [shape: f32[2,256,8], index: 1, kind: output, shape index: {}]  }
   0x1   :  { %8 = vsyncpa [#allocation3 + $0x1], 0  ;;  %s430_s6 = smov 0   ;;  %s432_s7 = smov 0  }
   0x2   :  { %s434_s8 = smov 0   ;;  %s436_s9 = smov 0  }
   0x3 LB: > { %s449_s10 = sadd.s32 4294967295, %s417_s9   ;;  %s452_s11 = sadd.s32 1, %s417_s9   ;;  %s417_s9 = sphi %s436_s9, %s607_s9   ;;  %s413_s8 = sphi %s434_s8, %s606_s8   ;;  %s409_s7 = sphi %s432_s7, %s605_s7   ;;  %s405_s6 = sphi %s430_s6, %s604_s6  }
   0x4   : > { %s18_s12 = ssub.s32 %s417_s9, %s452_s11  ;;  %s21_s13 = sadd.s32 1, %s413_s8 }
   0x5   : > { %p19_p0 = scmp.eq.s32.totalorder %s18_s12, 0  ;;  %p28_p1 = scmp.ne.s32.totalorder %s413_s8, %s409_s7 }
   0x6   : > { %p29_p2 = scmp.eq.s32.totalorder %s417_s9, 0  ;;  %p34_p3 = scmp.ne.s32.totalorder %s409_s7, %s405_s6 }
   0x7   : > { %s462_s14 = scalar_select %p19_p0, %s413_s8, %s21_s13  }
   0x8   : > { %p30_p4 = por %p29_p2, %p28_p1  ;;  %p35_p5 = scmp.eq.s32.totalorder %s449_s10, 0 }
   0x9   : > { %p321_p6 = scmp.lt.s32.totalorder %s417_s9, 2  ;;  %s84_s16 = sand.u32 1, %s413_s8  }
   0xa   : > { %p466_p7 = por %p35_p5, %p34_p3  ;;  %s304_s17 = sshll.u32 %s84_s16, 4 }
   0xb   : > { %s313_s18 = sshll.u32 %s417_s9, 8  ;;  %s88_s22 = scalar_lea.vmem [#allocation2], %s304_s17 }
   0xc   : > { %s599_s15 = scalar_select %p466_p7, 1, 0 }
   0xd   : > { %s475_s21 = scalar_lea.hbm %s596_s0, %s313_s18  ;;  %s96_s23 = sshll.u32 %s88_s22, 4  ;;  %s477_s23 = int_to_ptr.vmem [resolvable:$true] %s96_s23 }
   0xe   : > { %p479_p8 = pnand %p321_p6, %p30_p4  ;;  %s85_s25 = scalar_lea.sflag [#allocation3], %s84_s16 }
   0xf   : > { %s355_s26 = scalar_lea.hbm %s475_s21, 256  ;;  %s360_s29 = scalar_lea.hbm %s596_s0, 512 }
  0x10   : > { %p356_p11 = scmp.ne.s32.totalorder %s475_s21, %s355_s26  ;;  %p357_p12 = pneg %p479_p8 }
  0x11   : > { %p361_p1 = scmp.lt.s32.totalorder %s475_s21, %s596_s0  ;;  %p362_p2 = scmp.lt.s32.totalorder %s360_s29, %s355_s26 }
  0x12   : > { %p358_p13 = pnand %p357_p12, %p356_p11 }
  0x13   : > { %p363_p3 = por %p362_p2, %p361_p1 }
  0x14   : > { %p359_p0 = pneg %p358_p13 }
  0x16   : > { %p364_p4 = pnand %p363_p3, %p359_p0 }
  0x18   : > { %367 = shalt.err (!%p364_p4)
}
  0x19   : > { %s368_s3 = scalar_lea.vmem %s477_s23, 256  ;;  %s419_s4 = smov [#allocation2]  }
  0x1a   : > { %p369_p5 = scmp.ne.s32.totalorder %s477_s23, %s368_s3  ;;  %s373_s5 = sshll.u32 %s419_s4, 4  ;;  %s374_s5 = int_to_ptr.vmem [resolvable:$false] %s373_s5 }
  0x1b   : > { %s375_s6 = scalar_lea.vmem %s374_s5, 512  ;;  %p376_p13 = scmp.lt.s32.totalorder %s477_s23, %s374_s5 }
  0x1c   : > { %p371_p6 = pnand %p369_p5, %p357_p12  ;;  %p377_p9 = scmp.lt.s32.totalorder %s375_s6, %s368_s3 }
  0x1e   : > { %p372_p11 = pneg %p371_p6  ;;  %p378_p10 = por %p377_p9, %p376_p13 }
  0x20   : > { %p379_p7 = pnand %p378_p10, %p372_p11 }
  0x22   : > { %382 = shalt.err (!%p379_p7)
}
  0x23   : > { %320 = dma.hbm_to_vmem [thread:$0]  (!%p479_p8), %s475_s21, 256, %s477_s23, %s85_s25  }
  0x24   : > { %p601_p0 = scmp.lt.s32.totalorder %s417_s9, 3  ;;  %p602_p1 = scmp.ge.s32.totalorder %s417_s9, 1 }
  0x26   : > { %p102_p12 = pnand %p602_p1, %p601_p0 }
  0x27   : > { %s107_s12 = sand.u32 (!%p102_p12), 1, %s409_s7   ;;  %p603_p9 = scmp.ne.s32.totalorder (!%p102_p12), %s599_s15, 0 }
  0x28   : > { %105 = sbr.rel (%p102_p12) target bundleno = 297 (0x129), region = 24  ;;  %s308_s13 = sshll.u32 (!%p102_p12), %s107_s12, 4 }
  0x29   : > { %s108_s16 = scalar_lea.sflag (!%p102_p12), [#allocation3], %s107_s12  ;;  %s111_s17 = scalar_lea.vmem (!%p102_p12), [#allocation2], %s308_s13 }
  0x2d   : > { %400 = dma.done.wait (%p603_p9), %s108_s16, 256  }
  0x2e   : > { %402 = vsyncadd (%p603_p9), %s108_s16, 4294967040  ;;  %v135_v0 = vld [vmem:[%s111_s17] sm:$0xff]  ;;  %v136_v1 = vld [vmem:[%s111_s17 + $0x8] sm:$0xff]  ;;  %p130_p7 = scmp.lt.s32.totalorder %s449_s10, 1  ;;  %vm201_vm0 = vcmask 64512  }
  0x2f   : > { %137 = vxpose.xlu0.b32.start.end [1/1] (short) %v135_v0, 128 }
  0x30   : > { %s609_s10 = smov (!%p130_p7, %s449_s10), 1 }
  0x31   : > { %s314_s9 = sshll.u32 %s609_s10, 8 }
  0x32   : > { %s517_s20 = scalar_lea.vmem %s597_s1, %s314_s9 }
  0x6c   : > { %169 = vxpose.xlu0.b32.start.end [1/1] (short) %v136_v1, 128 }
  0xab   : > { %v153_v2 = vpop.trf.xlu0 }
  0xac   : > { %202 = vst.msk [vmem:[%s517_s20] sm:$0xff] %vm201_vm0, %v153_v2 }
  0xaf   : > { %v154_v3 = vpop.trf.xlu0 }
  0xb0   : > { %203 = vst.msk [vmem:[%s517_s20 + $0x8] sm:$0xff] %vm201_vm0, %v154_v3 }
  0xb3   : > { %v155_v4 = vpop.trf.xlu0 }
  0xb4   : > { %204 = vst.msk [vmem:[%s517_s20 + $0x10] sm:$0xff] %vm201_vm0, %v155_v4 }
  0xb7   : > { %v156_v5 = vpop.trf.xlu0 }
  0xb8   : > { %205 = vst.msk [vmem:[%s517_s20 + $0x18] sm:$0xff] %vm201_vm0, %v156_v5 }
  0xbb   : > { %v157_v6 = vpop.trf.xlu0 }
  0xbc   : > { %206 = vst.msk [vmem:[%s517_s20 + $0x20] sm:$0xff] %vm201_vm0, %v157_v6 }
  0xbf   : > { %v158_v7 = vpop.trf.xlu0 }
  0xc0   : > { %207 = vst.msk [vmem:[%s517_s20 + $0x28] sm:$0xff] %vm201_vm0, %v158_v7 }
  0xc3   : > { %v159_v8 = vpop.trf.xlu0 }
  0xc4   : > { %208 = vst.msk [vmem:[%s517_s20 + $0x30] sm:$0xff] %vm201_vm0, %v159_v8 }
  0xc7   : > { %v160_v9 = vpop.trf.xlu0 }
  0xc8   : > { %209 = vst.msk [vmem:[%s517_s20 + $0x38] sm:$0xff] %vm201_vm0, %v160_v9 }
  0xcb   : > { %v161_v10 = vpop.trf.xlu0 }
  0xcc   : > { %210 = vst.msk [vmem:[%s517_s20 + $0x40] sm:$0xff] %vm201_vm0, %v161_v10 }
  0xcf   : > { %v162_v11 = vpop.trf.xlu0 }
  0xd0   : > { %211 = vst.msk [vmem:[%s517_s20 + $0x48] sm:$0xff] %vm201_vm0, %v162_v11 }
  0xd3   : > { %v163_v12 = vpop.trf.xlu0 }
  0xd4   : > { %212 = vst.msk [vmem:[%s517_s20 + $0x50] sm:$0xff] %vm201_vm0, %v163_v12 }
  0xd7   : > { %v164_v13 = vpop.trf.xlu0 }
  0xd8   : > { %213 = vst.msk [vmem:[%s517_s20 + $0x58] sm:$0xff] %vm201_vm0, %v164_v13 }
  0xdb   : > { %v165_v14 = vpop.trf.xlu0 }
  0xdc   : > { %214 = vst.msk [vmem:[%s517_s20 + $0x60] sm:$0xff] %vm201_vm0, %v165_v14 }
  0xdf   : > { %v166_v15 = vpop.trf.xlu0 }
  0xe0   : > { %215 = vst.msk [vmem:[%s517_s20 + $0x68] sm:$0xff] %vm201_vm0, %v166_v15 }
  0xe3   : > { %v167_v16 = vpop.trf.xlu0 }
  0xe4   : > { %216 = vst.msk [vmem:[%s517_s20 + $0x70] sm:$0xff] %vm201_vm0, %v167_v16 }
  0xe7   : > { %v168_v17 = vpop.trf.xlu0 }
  0xe8   : > { %217 = vst.msk [vmem:[%s517_s20 + $0x78] sm:$0xff] %vm201_vm0, %v168_v17 }
  0xeb   : > { %v185_v18 = vpop.trf.xlu0 }
  0xec   : > { %218 = vst.msk [vmem:[%s517_s20 + $0x80] sm:$0xff] %vm201_vm0, %v185_v18 }
  0xef   : > { %v186_v19 = vpop.trf.xlu0 }
  0xf0   : > { %219 = vst.msk [vmem:[%s517_s20 + $0x88] sm:$0xff] %vm201_vm0, %v186_v19 }
  0xf3   : > { %v187_v20 = vpop.trf.xlu0 }
  0xf4   : > { %220 = vst.msk [vmem:[%s517_s20 + $0x90] sm:$0xff] %vm201_vm0, %v187_v20 }
  0xf7   : > { %v188_v21 = vpop.trf.xlu0 }
  0xf8   : > { %221 = vst.msk [vmem:[%s517_s20 + $0x98] sm:$0xff] %vm201_vm0, %v188_v21 }
  0xfb   : > { %v189_v22 = vpop.trf.xlu0 }
  0xfc   : > { %222 = vst.msk [vmem:[%s517_s20 + $0xa0] sm:$0xff] %vm201_vm0, %v189_v22 }
  0xff   : > { %v190_v23 = vpop.trf.xlu0 }
 0x100   : > { %223 = vst.msk [vmem:[%s517_s20 + $0xa8] sm:$0xff] %vm201_vm0, %v190_v23 }
 0x103   : > { %v191_v24 = vpop.trf.xlu0 }
 0x104   : > { %224 = vst.msk [vmem:[%s517_s20 + $0xb0] sm:$0xff] %vm201_vm0, %v191_v24 }
 0x107   : > { %v192_v25 = vpop.trf.xlu0 }
 0x108   : > { %225 = vst.msk [vmem:[%s517_s20 + $0xb8] sm:$0xff] %vm201_vm0, %v192_v25 }
 0x10b   : > { %v193_v26 = vpop.trf.xlu0 }
 0x10c   : > { %226 = vst.msk [vmem:[%s517_s20 + $0xc0] sm:$0xff] %vm201_vm0, %v193_v26 }
 0x10f   : > { %v194_v27 = vpop.trf.xlu0 }
 0x110   : > { %227 = vst.msk [vmem:[%s517_s20 + $0xc8] sm:$0xff] %vm201_vm0, %v194_v27 }
 0x113   : > { %v195_v28 = vpop.trf.xlu0 }
 0x114   : > { %228 = vst.msk [vmem:[%s517_s20 + $0xd0] sm:$0xff] %vm201_vm0, %v195_v28 }
 0x117   : > { %v196_v29 = vpop.trf.xlu0 }
 0x118   : > { %229 = vst.msk [vmem:[%s517_s20 + $0xd8] sm:$0xff] %vm201_vm0, %v196_v29 }
 0x11b   : > { %v197_v30 = vpop.trf.xlu0 }
 0x11c   : > { %230 = vst.msk [vmem:[%s517_s20 + $0xe0] sm:$0xff] %vm201_vm0, %v197_v30 }
 0x11f   : > { %v198_v31 = vpop.trf.xlu0 }
 0x120   : > { %231 = vst.msk [vmem:[%s517_s20 + $0xe8] sm:$0xff] %vm201_vm0, %v198_v31 }
 0x123   : > { %v199_v32 = vpop.trf.xlu0 }
 0x124   : > { %232 = vst.msk [vmem:[%s517_s20 + $0xf0] sm:$0xff] %vm201_vm0, %v199_v32 }
 0x127   : > { %v200_v33 = vpop.trf.xlu0 }
 0x128   : > { %233 = vst.msk [vmem:[%s517_s20 + $0xf8] sm:$0xff] %vm201_vm0, %v200_v33 }
 0x129 PF: > { %p11_p8 = scmp.ge.s32.totalorder %s452_s11, 4   ;;  %s604_s6 = smov %s409_s7 }
 0x12a   : > { %s605_s7 = smov %s413_s8  ;;  %s606_s8 = smov %s462_s14 }
 0x12b   : > { %s607_s9 = smov %s452_s11  ;;  %13 = sbr.rel (!%p11_p8) target bundleno = 3 (0x3), region = 64 }
 0x130   :  { %255 = vsyncpa [#allocation3], 1 }
 0x131   :  { %257 = vsyncpa [#allocation3 + $0x1], 1 }

</bundles_post_ra>
